<compile_context>
chip_gen: v6e
topology: v6e:2x2x1
jax: 0.10.0
libtpu: 0.0.40
codegen_flags: <defaults>
</compile_context>

<pallas_src>
import jax
import jax.numpy as jnp
from jax.experimental import pallas as pl
from jax.experimental.pallas import tpu as pltpu


def _round_up(x: int, m: int) -> int:
    return ((x + m - 1) // m) * m


# --------------------------------------------------------------------------------------
# Kernel body
# --------------------------------------------------------------------------------------
def _ffn_kernel(x_ref, w1_ref, b1_ref, w3_ref, b3_ref, w2_ref, b2_ref, o_ref, acc_ref):
    k = pl.program_id(1)

    @pl.when(k == 0)
    def _():
        acc_ref[...] = jnp.zeros_like(acc_ref)

    x = x_ref[...]  # keep operands in input dtype (bf16 hits bf16 MXU peak)

    # Hidden-chunk GEMMs with f32 accumulation.
    h1 = jnp.dot(x, w1_ref[...], preferred_element_type=jnp.float32)
    h1 = h1 + b1_ref[...].astype(jnp.float32)
    h3 = jnp.dot(x, w3_ref[...], preferred_element_type=jnp.float32)
    h3 = h3 + b3_ref[...].astype(jnp.float32)

    # SiLU gate in f32 (sigmoid goes to the EUP), elementwise in the hidden chunk.
    gated = (h1 * jax.nn.sigmoid(h1)) * h3

    # Third GEMM: cast gated to W2's dtype, accumulate into the f32 scratch.
    acc_ref[...] += jnp.dot(
        gated.astype(w2_ref.dtype), w2_ref[...], preferred_element_type=jnp.float32
    )

    @pl.when(k == pl.num_programs(1) - 1)
    def _():
        o_ref[...] = (acc_ref[...] + b2_ref[...].astype(jnp.float32)).astype(o_ref.dtype)


# --------------------------------------------------------------------------------------
# Generation-aware tiling
# --------------------------------------------------------------------------------------
def _tpu_config():
    """Returns (tm_max, th_target, mxu_align, two_core, vmem_phys_bytes)."""
    kind = ""
    try:
        kind = jax.devices()[0].device_kind.lower()
    except Exception:
        pass

    if "7x" in kind or "v7" in kind:                       # v7x: 2 TCs, 64 MiB VMEM
        tm_max, th_target, mxu_align, two_core, vmem_default = 512, 256, 256, True, 64 << 20
    elif "v6" in kind:                                     # v6e: 256-wide MXU, 128 MiB
        tm_max, th_target, mxu_align, two_core, vmem_default = 1024, 512, 256, False, 128 << 20
    elif "v5e" in kind or "v5 lite" in kind or "v5lite" in kind:  # v5e: 128-wide MXU
        tm_max, th_target, mxu_align, two_core, vmem_default = 256, 1024, 128, False, 128 << 20
    else:                                                  # unknown: conservative
        tm_max, th_target, mxu_align, two_core, vmem_default = 512, 512, 128, False, 64 << 20

    try:
        vmem_phys = int(pltpu.get_tpu_info().vmem_capacity_bytes)
    except Exception:
        vmem_phys = vmem_default
    return tm_max, th_target, mxu_align, two_core, vmem_phys


def _align_lane(d: int, mxu_align: int) -> int:
    # Lane dims must be multiples of 128; when padding is needed anyway, pad to the
    # full MXU width (256 on v6e/v7x). Already-128-aligned dims are left untouched.
    if d % 128 == 0:
        return d
    return _round_up(d, mxu_align)


def _vmem_bytes(tm, th, dim_p, x_isz, w_isz):
    return (
        2 * tm * dim_p * x_isz            # x tile (double-buffered)
        + 2 * 2 * dim_p * th * w_isz      # W1, W3 chunks
        + 2 * th * dim_p * w_isz          # W2 chunk
        + 2 * (2 * th + dim_p) * w_isz    # biases
        + 2 * tm * dim_p * x_isz          # out tile
        + tm * dim_p * 4                  # f32 accumulator scratch
    )


def _select_tiles(n, dim, hidden, x_dtype, w_dtype):
    tm_max, th_target, mxu_align, two_core, vmem_phys = _tpu_config()
    x_isz = jnp.dtype(x_dtype).itemsize
    w_isz = jnp.dtype(w_dtype).itemsize

    dim_p = _align_lane(dim, mxu_align)
    th_eff = min(th_target, _align_lane(hidden, mxu_align))

    # Sub-32-bit dtypes pack rows along sublanes: keep tm a multiple of the pack factor.
    row_align = 8 if x_isz >= 4 else (16 if x_isz == 2 else 32)
    tm_eff = min(tm_max, _round_up(n, row_align))

    # Keep >=2 row tiles when n allows so the "parallel" axis splits across both
    # v7x TensorCores instead of idling one of them.
    if two_core and n >= 2 * row_align:
        tm_eff = min(tm_eff, _round_up(-(-n // 2), row_align))

    # Bound ragged-tail waste (padded rows are wasted MXU work) to ~15%.
    while tm_eff > 128:
        n_p = _round_up(n, tm_eff)
        if (n_p - n) / n_p <= 0.15:
            break
        tm_eff = max(128, _round_up(tm_eff // 2, row_align))

    # Fit the double-buffered working set into *physical* VMEM (critical on v7x's 64 MiB).
    budget = int(vmem_phys * 0.85)
    while th_eff > 128 and _vmem_bytes(tm_eff, th_eff, dim_p, x_isz, w_isz) > budget:
        th_eff = max(128, _round_up(th_eff // 2, 128))
    while tm_eff > 128 and _vmem_bytes(tm_eff, th_eff, dim_p, x_isz, w_isz) > budget:
        tm_eff = max(128, _round_up(tm_eff // 2, row_align))

    n_p = _round_up(n, tm_eff)
    hid_p = _round_up(hidden, th_eff)

    vmem_est = _vmem_bytes(tm_eff, th_eff, dim_p, x_isz, w_isz)
    vmem_limit = int(min(max(vmem_est * 3 // 2, 32 << 20), int(vmem_phys * 0.9)))
    return tm_eff, th_eff, dim_p, n_p, hid_p, vmem_limit


def _pad2d(a, rows, cols):
    if a.shape == (rows, cols):
        return a
    return jnp.pad(a, ((0, rows - a.shape[0]), (0, cols - a.shape[1])))


# --------------------------------------------------------------------------------------
# Wrapper
# --------------------------------------------------------------------------------------
def feed_forward_pallas(x, w1, b1, w3, b3, w2, b2):
    """SwiGLU FFN: w2(silu(w1 x + b1) * (w3 x + b3)) + b2.

    x: [..., dim]; w1/w3: [dim, hidden]; w2: [hidden, dim]; b1/b3: [hidden]; b2: [dim].
    """
    orig_shape = x.shape
    dim = orig_shape[-1]
    hidden = w1.shape[1]

    x2d = x.reshape(-1, dim)
    n = x2d.shape[0]

    tm, th, dim_p, n_p, hid_p, vmem_limit = _select_tiles(n, dim, hidden, x.dtype, w1.dtype)

    # Zero-padding is mathematically exact (zero rows/cols contribute nothing; padded
    # output rows/cols are sliced off). All pads below are no-ops when shapes are
    # already aligned; in production, pad the weights once at parameter setup so the
    # per-call path never touches them.
    xp = _pad2d(x2d, n_p, dim_p)
    w1p = _pad2d(w1, dim_p, hid_p)
    w3p = _pad2d(w3, dim_p, hid_p)
    w2p = _pad2d(w2, hid_p, dim_p)
    b1p = _pad2d(b1.reshape(1, -1), 1, hid_p)
    b3p = _pad2d(b3.reshape(1, -1), 1, hid_p)
    b2p = _pad2d(b2.reshape(1, -1), 1, dim_p)

    grid = (n_p // tm, hid_p // th)  # reduction (hidden) axis last

    x_isz = jnp.dtype(x.dtype).itemsize
    w_isz = jnp.dtype(w1.dtype).itemsize
    n_row_tiles = grid[0]
    weight_bytes = (2 * dim_p * hid_p + hid_p * dim_p + 2 * hid_p + dim_p) * w_isz
    cost = pl.CostEstimate(
        flops=int(6 * n_p * dim_p * hid_p),                # three GEMMs
        transcendentals=int(n_p * hid_p),                  # sigmoid
        bytes_accessed=int(
            n_p * dim_p * x_isz                            # x read (resident across k)
            + n_row_tiles * weight_bytes                   # weights re-streamed per row tile
            + n_p * dim_p * x_isz                          # output writeback
        ),
    )

    # TODO(synk): decode-sized n (single row tile) is inherently weight-bandwidth-bound;
    # int8 weights (v5e/v6e) or fp8 weights (v7x) would ~2x that regime.
    out = pl.pallas_call(
        _ffn_kernel,
        out_shape=jax.ShapeDtypeStruct((n_p, dim_p), x.dtype),
        grid_spec=pltpu.PrefetchScalarGridSpec(
            num_scalar_prefetch=0,
            grid=grid,
            in_specs=[
                pl.BlockSpec((tm, dim_p), lambda i, k: (i, 0)),   # x row tile
                pl.BlockSpec((dim_p, th), lambda i, k: (0, k)),   # W1 hidden chunk
                pl.BlockSpec((1, th), lambda i, k: (0, k)),       # b1 chunk
                pl.BlockSpec((dim_p, th), lambda i, k: (0, k)),   # W3 hidden chunk
                pl.BlockSpec((1, th), lambda i, k: (0, k)),       # b3 chunk
                pl.BlockSpec((th, dim_p), lambda i, k: (k, 0)),   # W2 hidden chunk
                pl.BlockSpec((1, dim_p), lambda i, k: (0, 0)),    # b2
            ],
            out_specs=pl.BlockSpec((tm, dim_p), lambda i, k: (i, 0)),
            scratch_shapes=[pltpu.VMEM((tm, dim_p), jnp.float32)],
        ),
        compiler_params=pltpu.CompilerParams(
            dimension_semantics=("parallel", "arbitrary"),
            vmem_limit_bytes=vmem_limit,
        ),
        cost_estimate=cost,
    )(xp, w1p, b1p, w3p, b3p, w2p, b2p)

    if n_p != n or dim_p != dim:
        out = out[:n, :dim]
    return out.reshape(orig_shape)


# --------------------------------------------------------------------------------------
# Reference + tests
# --------------------------------------------------------------------------------------
def feed_forward_ref(x, w1, b1, w3, b3, w2, b2):
    xf = x.astype(jnp.float32)
    h1 = xf @ w1.astype(jnp.float32) + b1.astype(jnp.float32)
    h3 = xf @ w3.astype(jnp.float32) + b3.astype(jnp.float32)
    g = jax.nn.silu(h1) * h3
    return g @ w2.astype(jnp.float32) + b2.astype(jnp.float32)


def _init_params(key, dim, hidden, dtype):
    ks = jax.random.split(key, 6)

    def init(k, fan_in, shape):
        bound = 1.0 / (fan_in ** 0.5)
        return jax.random.uniform(k, shape, jnp.float32, -bound, bound).astype(dtype)

    w1 = init(ks[0], dim, (dim, hidden))      # [dim, hidden]  (transposed vs torch)
    b1 = init(ks[1], dim, (hidden,))
    w3 = init(ks[2], dim, (dim, hidden))
    b3 = init(ks[3], dim, (hidden,))
    w2 = init(ks[4], hidden, (hidden, dim))   # [hidden, dim]
    b2 = init(ks[5], hidden, (dim,))
    return w1, b1, w3, b3, w2, b2


if __name__ == "__main__":
    key = jax.random.PRNGKey(0)
    k_small, k_big = jax.random.split(key)

    # --- Test 1: module config FeedForward(dim=32, hidden_dim=64, multiple_of=32) -----
    # (multiple_of is unused in the module's forward path.)
    dim, hidden = 32, 64
    batch, seq = 2, 8
    k_x, k_p = jax.random.split(k_small)
    w1, b1, w3, b3, w2, b2 = _init_params(k_p, dim, hidden, jnp.float32)
    x = jax.random.normal(k_x, (batch, seq, dim), jnp.float32)

    out = feed_forward_pallas(x, w1, b1, w3, b3, w2, b2)
    out = jax.block_until_ready(out)
    ref = feed_forward_ref(x, w1, b1, w3, b3, w2, b2)
    assert out.shape == (batch, seq, dim)
    assert jnp.allclose(out, ref, atol=1e-5, rtol=1e-5), "f32 mismatch vs reference"

    # --- Test 2: bf16 path exercising ragged rows + multi-chunk hidden accumulation ---
    dim2, hidden2 = 256, 1024
    n2 = 320  # ragged vs. typical row tiles -> exercises padding / tile-choice logic
    k_x2, k_p2 = jax.random.split(k_big)
    p2 = _init_params(k_p2, dim2, hidden2, jnp.bfloat16)
    x2 = jax.random.normal(k_x2, (n2, dim2), jnp.float32).astype(jnp.bfloat16)

    out2 = feed_forward_pallas(x2, *p2)
    out2 = jax.block_until_ready(out2)
    ref2 = feed_forward_ref(x2, *p2)
    err = jnp.max(jnp.abs(out2.astype(jnp.float32) - ref2))
    tol = 2e-2 * jnp.max(jnp.abs(ref2)) + 1e-2  # bf16 operands vs f32 reference
    assert out2.shape == (n2, dim2)
    assert err <= tol, f"bf16 mismatch vs reference: err={err}, tol={tol}"

    print("KERNEL_OK")
</pallas_src>

<mosaic_0001>
module attributes {stable_mosaic.version = 11 : i64} {
  func.func @_ffn_kernel(%arg0: i32, %arg1: i32, %arg2: memref<16x128xf32, #tpu.memory_space<vmem>>, %arg3: memref<128x128xf32, #tpu.memory_space<vmem>>, %arg4: memref<1x128xf32, #tpu.memory_space<vmem>>, %arg5: memref<128x128xf32, #tpu.memory_space<vmem>>, %arg6: memref<1x128xf32, #tpu.memory_space<vmem>>, %arg7: memref<128x128xf32, #tpu.memory_space<vmem>>, %arg8: memref<1x128xf32, #tpu.memory_space<vmem>>, %arg9: memref<16x128xf32, #tpu.memory_space<vmem>>, %arg10: memref<16x128xf32, #tpu.memory_space<vmem>>) attributes {dimension_semantics = [#tpu.dimension_semantics<parallel>, #tpu.dimension_semantics<arbitrary>], iteration_bounds = array<i64: 1, 1>, scalar_prefetch = 0 : i64, scratch_operands = 1 : i64, tpu.core_type = #tpu.core_type<tc>, window_params = [{transform_indices = @transform_0, window_bounds = array<i64: 16, 128>}, {transform_indices = @transform_1, window_bounds = array<i64: 128, 128>}, {transform_indices = @transform_2, window_bounds = array<i64: 1, 128>}, {transform_indices = @transform_3, window_bounds = array<i64: 128, 128>}, {transform_indices = @transform_4, window_bounds = array<i64: 1, 128>}, {transform_indices = @transform_5, window_bounds = array<i64: 128, 128>}, {pipeline_mode = #tpu.pipeline_mode<synchronous>, transform_indices = @transform_6, window_bounds = array<i64: 1, 128>}, {transform_indices = @transform_7, window_bounds = array<i64: 16, 128>}]} {
    %c0_i32 = arith.constant 0 : i32
    %0 = arith.cmpi eq, %arg1, %c0_i32 : i32
    %1 = arith.extui %0 : i1 to i32
    %c0_i32_0 = arith.constant 0 : i32
    %2 = arith.cmpi ne, %1, %c0_i32_0 : i32
    scf.if %2 {
      %cst_21 = arith.constant 0.000000e+00 : f32
      %29 = vector.broadcast %cst_21 : f32 to vector<16x128xf32>
      %c0_22 = arith.constant 0 : index
      %c0_23 = arith.constant 0 : index
      %30 = vector.load %arg10[%c0_22, %c0_23] : memref<16x128xf32, #tpu.memory_space<vmem>>, vector<16x128xf32>
      tpu.vector_store %arg10[%c0_22, %c0_23], %29 {strides = array<i32>} : memref<16x128xf32, #tpu.memory_space<vmem>>, vector<16x128xf32>,
    } else {
    }
    %c0 = arith.constant 0 : index
    %c0_1 = arith.constant 0 : index
    %3 = vector.load %arg2[%c0, %c0_1] : memref<16x128xf32, #tpu.memory_space<vmem>>, vector<16x128xf32>
    %c0_2 = arith.constant 0 : index
    %c0_3 = arith.constant 0 : index
    %4 = vector.load %arg3[%c0_2, %c0_3] : memref<128x128xf32, #tpu.memory_space<vmem>>, vector<128x128xf32>
    %cst = arith.constant dense<0.000000e+00> : vector<16x128xf32>
    %5 = tpu.matmul %3, %4, %cst {dimension_numbers = #tpu.dot_dimension_numbers<[1], [0], [0], [1], [0, 0, 1, 1], [], []>} : vector<16x128xf32>, vector<128x128xf32>, vector<16x128xf32> -> vector<16x128xf32>
    %c0_4 = arith.constant 0 : index
    %c0_5 = arith.constant 0 : index
    %6 = vector.load %arg4[%c0_4, %c0_5] : memref<1x128xf32, #tpu.memory_space<vmem>>, vector<1x128xf32>
    %7 = vector.broadcast %6 : vector<1x128xf32> to vector<16x128xf32>
    %8 = arith.addf %5, %7 : vector<16x128xf32>
    %c0_6 = arith.constant 0 : index
    %c0_7 = arith.constant 0 : index
    %9 = vector.load %arg5[%c0_6, %c0_7] : memref<128x128xf32, #tpu.memory_space<vmem>>, vector<128x128xf32>
    %cst_8 = arith.constant dense<0.000000e+00> : vector<16x128xf32>
    %10 = tpu.matmul %3, %9, %cst_8 {dimension_numbers = #tpu.dot_dimension_numbers<[1], [0], [0], [1], [0, 0, 1, 1], [], []>} : vector<16x128xf32>, vector<128x128xf32>, vector<16x128xf32> -> vector<16x128xf32>
    %c0_9 = arith.constant 0 : index
    %c0_10 = arith.constant 0 : index
    %11 = vector.load %arg6[%c0_9, %c0_10] : memref<1x128xf32, #tpu.memory_space<vmem>>, vector<1x128xf32>
    %12 = vector.broadcast %11 : vector<1x128xf32> to vector<16x128xf32>
    %13 = arith.addf %10, %12 : vector<16x128xf32>
    %14 = arith.negf %8 : vector<16x128xf32>
    %15 = math.exp %14 : vector<16x128xf32>
    %cst_11 = arith.constant 1.000000e+00 : f32
    %16 = vector.broadcast %cst_11 : f32 to vector<16x128xf32>
    %17 = arith.addf %16, %15 : vector<16x128xf32>
    %18 = arith.divf %16, %17 : vector<16x128xf32>
    %19 = arith.mulf %8, %18 : vector<16x128xf32>
    %20 = arith.mulf %19, %13 : vector<16x128xf32>
    %c0_12 = arith.constant 0 : index
    %c0_13 = arith.constant 0 : index
    %21 = vector.load %arg10[%c0_12, %c0_13] : memref<16x128xf32, #tpu.memory_space<vmem>>, vector<16x128xf32>
    %c0_14 = arith.constant 0 : index
    %c0_15 = arith.constant 0 : index
    %22 = vector.load %arg7[%c0_14, %c0_15] : memref<128x128xf32, #tpu.memory_space<vmem>>, vector<128x128xf32>
    %cst_16 = arith.constant dense<0.000000e+00> : vector<16x128xf32>
    %23 = tpu.matmul %20, %22, %cst_16 {dimension_numbers = #tpu.dot_dimension_numbers<[1], [0], [0], [1], [0, 0, 1, 1], [], []>} : vector<16x128xf32>, vector<128x128xf32>, vector<16x128xf32> -> vector<16x128xf32>
    %24 = arith.addf %21, %23 : vector<16x128xf32>
    %c0_17 = arith.constant 0 : index
    %c0_18 = arith.constant 0 : index
    %25 = vector.load %arg10[%c0_17, %c0_18] : memref<16x128xf32, #tpu.memory_space<vmem>>, vector<16x128xf32>
    tpu.vector_store %arg10[%c0_17, %c0_18], %24 {strides = array<i32>} : memref<16x128xf32, #tpu.memory_space<vmem>>, vector<16x128xf32>,
    %c0_i32_19 = arith.constant 0 : i32
    %26 = arith.cmpi eq, %arg1, %c0_i32_19 : i32
    %27 = arith.extui %26 : i1 to i32
    %c0_i32_20 = arith.constant 0 : i32
    %28 = arith.cmpi ne, %27, %c0_i32_20 : i32
    scf.if %28 {
      %c0_21 = arith.constant 0 : index
      %c0_22 = arith.constant 0 : index
      %29 = vector.load %arg10[%c0_21, %c0_22] : memref<16x128xf32, #tpu.memory_space<vmem>>, vector<16x128xf32>
      %c0_23 = arith.constant 0 : index
      %c0_24 = arith.constant 0 : index
      %30 = vector.load %arg8[%c0_23, %c0_24] : memref<1x128xf32, #tpu.memory_space<vmem>>, vector<1x128xf32>
      %31 = vector.broadcast %30 : vector<1x128xf32> to vector<16x128xf32>
      %32 = arith.addf %29, %31 : vector<16x128xf32>
      %c0_25 = arith.constant 0 : index
      %c0_26 = arith.constant 0 : index
      %33 = vector.load %arg9[%c0_25, %c0_26] : memref<16x128xf32, #tpu.memory_space<vmem>>, vector<16x128xf32>
      tpu.vector_store %arg9[%c0_25, %c0_26], %32 {strides = array<i32>} : memref<16x128xf32, #tpu.memory_space<vmem>>, vector<16x128xf32>,
    } else {
    }
    return
  }
  func.func @transform_0(%arg0: i32, %arg1: i32) -> (i32, i32) {
    %c0_i32 = arith.constant 0 : i32
    %c0_i32_0 = arith.constant 0 : i32
    return %arg0, %c0_i32 : i32, i32
  }
  func.func @transform_1(%arg0: i32, %arg1: i32) -> (i32, i32) {
    %c0_i32 = arith.constant 0 : i32
    %c0_i32_0 = arith.constant 0 : i32
    return %c0_i32, %arg1 : i32, i32
  }
  func.func @transform_2(%arg0: i32, %arg1: i32) -> (i32, i32) {
    %c0_i32 = arith.constant 0 : i32
    %c0_i32_0 = arith.constant 0 : i32
    return %c0_i32, %arg1 : i32, i32
  }
  func.func @transform_3(%arg0: i32, %arg1: i32) -> (i32, i32) {
    %c0_i32 = arith.constant 0 : i32
    %c0_i32_0 = arith.constant 0 : i32
    return %c0_i32, %arg1 : i32, i32
  }
  func.func @transform_4(%arg0: i32, %arg1: i32) -> (i32, i32) {
    %c0_i32 = arith.constant 0 : i32
    %c0_i32_0 = arith.constant 0 : i32
    return %c0_i32, %arg1 : i32, i32
  }
  func.func @transform_5(%arg0: i32, %arg1: i32) -> (i32, i32) {
    %c0_i32 = arith.constant 0 : i32
    %c0_i32_0 = arith.constant 0 : i32
    return %arg1, %c0_i32 : i32, i32
  }
  func.func @transform_6(%arg0: i32, %arg1: i32) -> (i32, i32) {
    %c0_i32 = arith.constant 0 : i32
    %c0_i32_0 = arith.constant 0 : i32
    %c0_i32_1 = arith.constant 0 : i32
    return %c0_i32, %c0_i32_0 : i32, i32
  }
  func.func @transform_7(%arg0: i32, %arg1: i32) -> (i32, i32) {
    %c0_i32 = arith.constant 0 : i32
    %c0_i32_0 = arith.constant 0 : i32
    return %arg0, %c0_i32 : i32, i32
  }
}

</mosaic_0001>

<bundles_post_ra>
// kernel: tpu_custom_call.1
= control target key start
LH: loop header
LB: loop body
LE: loop exit
PB: predicated region body
PF: predicated region fallthrough
CT: control target
= control target key end

     0   :  { %12 = vsyncpa [#allocation4], 0  ;;  %s811_s0 = inlined_call_operand.hbm [shape: f32[16,128], index: 0, kind: input, shape index: {}]   ;;  %s812_s1 = inlined_call_operand.hbm [shape: f32[128,128], index: 1, kind: input, shape index: {}]   ;;  %s813_s2 = inlined_call_operand.vmem [shape: f32[1,128], index: 2, kind: input, shape index: {}]   ;;  %s814_s3 = inlined_call_operand.hbm [shape: f32[128,128], index: 3, kind: input, shape index: {}]   ;;  %s815_s4 = inlined_call_operand.vmem [shape: f32[1,128], index: 4, kind: input, shape index: {}]   ;;  %s816_s5 = inlined_call_operand.hbm [shape: f32[128,128], index: 5, kind: input, shape index: {}]   ;;  %s817_s6 = inlined_call_operand.vmem [shape: f32[1,128], index: 6, kind: input, shape index: {}]   ;;  %s818_s7 = inlined_call_operand.hbm [shape: f32[16,128], index: 7, kind: output, shape index: {}]  }
   0x1   :  { %13 = vsyncpa [#allocation7], 0 }
   0x2   :  { %14 = vsyncpa [#allocation10], 0 }
   0x3   :  { %15 = vsyncpa [#allocation5], 0  ;;  %s721_s24 = smov [#allocation6]   ;;  %s722_s26 = smov [#allocation3]  }
   0x4   :  { %s33_s25 = sshll.u32 %s721_s24, 4  ;;  %s21_s27 = sshll.u32 %s722_s26, 4  ;;  %s34_s25 = int_to_ptr.vmem [resolvable:$true] %s33_s25  ;;  %s22_s27 = int_to_ptr.vmem [resolvable:$true] %s21_s27 }
   0x5   :  { %s621_s28 = scalar_lea.vmem %s34_s25, 2048  ;;  %p626_p1 = scmp.lt.s32.totalorder %s34_s25, %s34_s25 }
   0x6   :  { %p622_p0 = scmp.ne.s32.totalorder %s34_s25, %s621_s28  ;;  %p627_p2 = scmp.lt.s32.totalorder %s621_s28, %s621_s28 }
   0x8   :  { %p628_p3 = por %p627_p2, %p626_p1 }
   0xa   :  { %p629_p4 = pnand %p628_p3, %p622_p0 }
   0xc   :  { %632 = shalt.err (!%p629_p4)
}
   0xd   :  { %s723_s29 = smov 128   ;;  %s724_s30 = smov 8  }
   0xe   :  { %39 = dma.hbm_to_vmem [thread:$0]  %s812_s1, 2048, %s34_s25, [#allocation7], %s723_s29, %s723_s29, %s724_s30  }
   0xf   :  { %s641_s10 = scalar_lea.vmem %s22_s27, 256  ;;  %p646_p6 = scmp.lt.s32.totalorder %s22_s27, %s22_s27 }
  0x10   :  { %p642_p5 = scmp.ne.s32.totalorder %s22_s27, %s641_s10  ;;  %p647_p7 = scmp.lt.s32.totalorder %s641_s10, %s641_s10 }
  0x12   :  { %p648_p8 = por %p647_p7, %p646_p6 }
  0x14   :  { %p649_p9 = pnand %p648_p8, %p642_p5 }
  0x16   :  { %652 = shalt.err (!%p649_p9)
}
  0x17   :  { %27 = dma.hbm_to_vmem [thread:$0]  %s811_s0, 256, %s22_s27, [#allocation4], %s723_s29, %s723_s29, %s724_s30  }
  0x18   :  { %s725_s13 = smov [#allocation8]   ;;  %s726_s15 = smov [#allocation9]  }
  0x19   :  { %s47_s14 = sshll.u32 %s725_s13, 4  ;;  %s61_s16 = sshll.u32 %s726_s15, 4  ;;  %s48_s14 = int_to_ptr.vmem [resolvable:$true] %s47_s14  ;;  %s62_s16 = int_to_ptr.vmem [resolvable:$true] %s61_s16 }
  0x1a   :  { %s661_s1 = scalar_lea.vmem %s48_s14, 2048  ;;  %p666_p11 = scmp.lt.s32.totalorder %s48_s14, %s48_s14 }
  0x1b   :  { %p662_p10 = scmp.ne.s32.totalorder %s48_s14, %s661_s1  ;;  %p667_p12 = scmp.lt.s32.totalorder %s661_s1, %s661_s1 }
  0x1d   :  { %p668_p13 = por %p667_p12, %p666_p11 }
  0x1f   :  { %p669_p0 = pnand %p668_p13, %p662_p10 }
  0x21   :  { %672 = shalt.err (!%p669_p0)
}
  0x22   :  { %53 = dma.hbm_to_vmem [thread:$0]  %s814_s3, 2048, %s48_s14, [#allocation7], %s723_s29, %s723_s29, %s724_s30  }
  0x23   :  { %s681_s0 = scalar_lea.vmem %s62_s16, 2048  ;;  %p686_p2 = scmp.lt.s32.totalorder %s62_s16, %s62_s16 }
  0x24   :  { %p682_p1 = scmp.ne.s32.totalorder %s62_s16, %s681_s0  ;;  %p687_p3 = scmp.lt.s32.totalorder %s681_s0, %s681_s0 }
  0x26   :  { %p688_p4 = por %p687_p3, %p686_p2 }
  0x28   :  { %p689_p5 = pnand %p688_p4, %p682_p1 }
  0x2a   :  { %692 = shalt.err (!%p689_p5)
}
  0x2b   :  { %67 = dma.hbm_to_vmem [thread:$0]  %s816_s5, 2048, %s62_s16, [#allocation10], %s723_s29, %s723_s29, %s724_s30  }
  0x2c   :  { %713 = dma.done.wait [#allocation4], 256  }
  0x2d   :  { %714 = vsyncadd [#allocation4], 4294967040 }
  0x2e   :  { %715 = dma.done.wait [#allocation7], 4096  }
  0x2f   :  { %716 = vsyncadd [#allocation7], 4294963200 }
  0x30   :  { %717 = dma.done.wait [#allocation10], 2048  }
  0x31   :  { %718 = vsyncadd [#allocation10], 4294965248  ;;  %v105_v0 = vld [vmem:[#allocation6 + $0x78] sm:$0xff]  ;;  %v104_v1 = vld [vmem:[#allocation6 + $0x70] sm:$0xff]  ;;  %s727_s24 = smov [#allocation11]  }
  0x32   :  { %493 = vmatprep.subr.mxu0 %v105_v0  ;;  %v103_v2 = vld [vmem:[#allocation6 + $0x68] sm:$0xff]  ;;  %v102_v3 = vld [vmem:[#allocation6 + $0x60] sm:$0xff]  ;;  %v792_v4 = vld [vmem:[#allocation3] sm:$0xff]  ;;  %s420_s25 = sshll.u32 %s727_s24, 4  ;;  %s421_s25 = int_to_ptr.vmem [resolvable:$true] %s420_s25 }
  0x33   :  { %494 = vmatpush3.msra.mxu0 %v105_v0  ;;  %v101_v5 = vld [vmem:[#allocation6 + $0x58] sm:$0xff]  ;;  %525 = vmatprep.mubr.f32.mxu0 %v792_v4  ;;  %v202_v7 = vld [vmem:[#allocation8 + $0x70] sm:$0xff]  ;;  %v201_v9 = vld [vmem:[#allocation8 + $0x68] sm:$0xff]  ;;  %p698_p7 = scmp.lt.s32.totalorder %s421_s25, %s421_s25 }
  0x34   :  { %495 = vmatprep.subr.mxu0 %v104_v1  ;;  %v203_v6 = vld [vmem:[#allocation8 + $0x78] sm:$0xff]  ;;  %v100_v8 = vld [vmem:[#allocation6 + $0x50] sm:$0xff]  ;;  %v99_v10 = vld [vmem:[#allocation6 + $0x48] sm:$0xff]  ;;  %560 = vmatprep.mubr.f32.mxu1 %v792_v4 }
  0x35   :  { %496 = vmatpush3.msra.mxu0 %v104_v1  ;;  %528 = vmatprep.subr.mxu1 %v203_v6  ;;  %v200_v11 = vld [vmem:[#allocation8 + $0x60] sm:$0xff]  ;;  %v199_v13 = vld [vmem:[#allocation8 + $0x58] sm:$0xff]  ;;  %v198_v15 = vld [vmem:[#allocation8 + $0x50] sm:$0xff] }
  0x36   :  { %497 = vmatprep.subr.mxu0 %v103_v2  ;;  %529 = vmatpush3.msra.mxu1 %v203_v6  ;;  %v98_v12 = vld [vmem:[#allocation6 + $0x40] sm:$0xff]  ;;  %v97_v14 = vld [vmem:[#allocation6 + $0x38] sm:$0xff]  ;;  %v96_v16 = vld [vmem:[#allocation6 + $0x30] sm:$0xff] }
  0x37   :  { %498 = vmatpush3.msra.mxu0 %v103_v2  ;;  %530 = vmatprep.subr.mxu1 %v202_v7  ;;  %v197_v17 = vld [vmem:[#allocation8 + $0x48] sm:$0xff]  ;;  %v196_v19 = vld [vmem:[#allocation8 + $0x40] sm:$0xff]  ;;  %v195_v21 = vld [vmem:[#allocation8 + $0x38] sm:$0xff] }
  0x38   :  { %499 = vmatprep.subr.mxu0 %v102_v3  ;;  %531 = vmatpush3.msra.mxu1 %v202_v7  ;;  %v95_v18 = vld [vmem:[#allocation6 + $0x28] sm:$0xff]  ;;  %v94_v20 = vld [vmem:[#allocation6 + $0x20] sm:$0xff]  ;;  %v93_v22 = vld [vmem:[#allocation6 + $0x18] sm:$0xff] }
  0x39   :  { %500 = vmatpush3.msra.mxu0 %v102_v3  ;;  %532 = vmatprep.subr.mxu1 %v201_v9  ;;  %v194_v23 = vld [vmem:[#allocation8 + $0x30] sm:$0xff]  ;;  %v193_v25 = vld [vmem:[#allocation8 + $0x28] sm:$0xff]  ;;  %v192_v27 = vld [vmem:[#allocation8 + $0x20] sm:$0xff] }
  0x3a   :  { %501 = vmatprep.subr.mxu0 %v101_v5  ;;  %533 = vmatpush3.msra.mxu1 %v201_v9  ;;  %v92_v24 = vld [vmem:[#allocation6 + $0x10] sm:$0xff]  ;;  %v91_v26 = vld [vmem:[#allocation6 + $0x8] sm:$0xff]  ;;  %v90_v28 = vld [vmem:[#allocation6] sm:$0xff] }
  0x3b   :  { %502 = vmatpush3.msra.mxu0 %v101_v5  ;;  %534 = vmatprep.subr.mxu1 %v200_v11  ;;  %v191_v29 = vld [vmem:[#allocation8 + $0x18] sm:$0xff]  ;;  %v190_v31 = vld [vmem:[#allocation8 + $0x10] sm:$0xff]  ;;  %v189_v32 = vld [vmem:[#allocation8 + $0x8] sm:$0xff] }
  0x3c   :  { %503 = vmatprep.subr.mxu0 %v100_v8  ;;  %535 = vmatpush3.msra.mxu1 %v200_v11  ;;  %v89_v30 = vld [vmem:[#allocation3 + $0x8] sm:$0xff]  ;;  %v188_v33 = vld [vmem:[#allocation8] sm:$0xff]  ;;  %v318_v35 = vld [vmem:[#allocation9 + $0x70] sm:$0xff] }
  0x3d   :  { %504 = vmatpush3.msra.mxu0 %v100_v8  ;;  %536 = vmatprep.subr.mxu1 %v199_v13  ;;  %v319_v34 = vld [vmem:[#allocation9 + $0x78] sm:$0xff]  ;;  %v317_v36 = vld [vmem:[#allocation9 + $0x68] sm:$0xff]  ;;  %v316_v37 = vld [vmem:[#allocation9 + $0x60] sm:$0xff] }
  0x3e   :  { %505 = vmatprep.subr.mxu0 %v99_v10  ;;  %537 = vmatpush3.msra.mxu1 %v199_v13  ;;  %v315_v38 = vld [vmem:[#allocation9 + $0x58] sm:$0xff]  ;;  %v314_v39 = vld [vmem:[#allocation9 + $0x50] sm:$0xff]  ;;  %v313_v40 = vld [vmem:[#allocation9 + $0x48] sm:$0xff] }
  0x3f   :  { %506 = vmatpush3.msra.mxu0 %v99_v10  ;;  %538 = vmatprep.subr.mxu1 %v198_v15  ;;  %v312_v41 = vld [vmem:[#allocation9 + $0x40] sm:$0xff]  ;;  %v311_v42 = vld [vmem:[#allocation9 + $0x38] sm:$0xff]  ;;  %v310_v43 = vld [vmem:[#allocation9 + $0x30] sm:$0xff] }
  0x40   :  { %507 = vmatprep.subr.mxu0 %v98_v12  ;;  %539 = vmatpush3.msra.mxu1 %v198_v15  ;;  %v309_v44 = vld [vmem:[#allocation9 + $0x28] sm:$0xff]  ;;  %v308_v45 = vld [vmem:[#allocation9 + $0x20] sm:$0xff]  ;;  %v307_v46 = vld [vmem:[#allocation9 + $0x18] sm:$0xff] }
  0x41   :  { %508 = vmatpush3.msra.mxu0 %v98_v12  ;;  %540 = vmatprep.subr.mxu1 %v197_v17  ;;  %v306_v47 = vld [vmem:[#allocation9 + $0x10] sm:$0xff]  ;;  %v305_v48 = vld [vmem:[#allocation9 + $0x8] sm:$0xff]  ;;  %v304_v49 = vld [vmem:[#allocation9] sm:$0xff] }
  0x42   :  { %509 = vmatprep.subr.mxu0 %v97_v14  ;;  %541 = vmatpush3.msra.mxu1 %v197_v17  ;;  %v434_v50 = vld [vmem:[%s813_s2] ss:$0 sm:$0xff] }
  0x43   :  { %510 = vmatpush3.msra.mxu0 %v97_v14  ;;  %542 = vmatprep.subr.mxu1 %v196_v19  ;;  %v435_v62 = vld [vmem:[%s815_s4] ss:$0 sm:$0xff]  ;;  %s693_s4 = scalar_lea.vmem %s421_s25, 256 }
  0x44   :  { %511 = vmatprep.subr.mxu0 %v96_v16  ;;  %543 = vmatpush3.msra.mxu1 %v196_v19  ;;  %v438_v8 = vld [vmem:[%s817_s6] ss:$0 sm:$0xff]  ;;  %p694_p6 = scmp.ne.s32.totalorder %s421_s25, %s693_s4  ;;  %p699_p8 = scmp.lt.s32.totalorder %s693_s4, %s693_s4 }
  0x45   :  { %512 = vmatpush3.msra.mxu0 %v96_v16  ;;  %544 = vmatprep.subr.mxu1 %v195_v21 }
  0x46   :  { %513 = vmatprep.subr.mxu0 %v95_v18  ;;  %545 = vmatpush3.msra.mxu1 %v195_v21  ;;  %p700_p9 = por %p699_p8, %p698_p7 }
  0x47   :  { %514 = vmatpush3.msra.mxu0 %v95_v18  ;;  %546 = vmatprep.subr.mxu1 %v194_v23 }
  0x48   :  { %515 = vmatprep.subr.mxu0 %v94_v20  ;;  %547 = vmatpush3.msra.mxu1 %v194_v23  ;;  %p701_p10 = pnand %p700_p9, %p694_p6 }
  0x49   :  { %516 = vmatpush3.msra.mxu0 %v94_v20  ;;  %548 = vmatprep.subr.mxu1 %v193_v25 }
  0x4a   :  { %517 = vmatprep.subr.mxu0 %v93_v22  ;;  %549 = vmatpush3.msra.mxu1 %v193_v25 }
  0x4b   :  { %518 = vmatpush3.msra.mxu0 %v93_v22  ;;  %550 = vmatprep.subr.mxu1 %v192_v27 }
  0x4c   :  { %519 = vmatprep.subr.mxu0 %v92_v24  ;;  %551 = vmatpush3.msra.mxu1 %v192_v27 }
  0x4d   :  { %520 = vmatpush3.msra.mxu0 %v92_v24  ;;  %552 = vmatprep.subr.mxu1 %v191_v29 }
  0x4e   :  { %521 = vmatprep.subr.mxu0 %v91_v26  ;;  %553 = vmatpush3.msra.mxu1 %v191_v29 }
  0x4f   :  { %522 = vmatpush3.msra.mxu0 %v91_v26  ;;  %554 = vmatprep.subr.mxu1 %v190_v31 }
  0x50   :  { %523 = vmatprep.subr.mxu0 %v90_v28  ;;  %555 = vmatpush3.msra.mxu1 %v190_v31 }
  0x51   :  { %524 = vmatpush3.msra.mxu0 %v90_v28  ;;  %556 = vmatprep.subr.mxu1 %v189_v32 }
  0x52   :  { %526 = vmatmul.mubr.f32.vlgmr.msra.gmra.mxu0 %v89_v30  ;;  %557 = vmatpush3.msra.mxu1 %v189_v32 }
  0x53   :  { %558 = vmatprep.subr.mxu1 %v188_v33  ;;  %563 = vmatprep.subr.mxu0 %v319_v34 }
  0x54   :  { %559 = vmatpush3.msra.mxu1 %v188_v33  ;;  %564 = vmatpush3.msra.mxu0 %v319_v34 }
  0x55   :  { %561 = vmatmul.mubr.f32.vlgmr.msra.gmra.mxu1 %v89_v30  ;;  %565 = vmatprep.subr.mxu0 %v318_v35 }
  0x56   :  { %566 = vmatpush3.msra.mxu0 %v318_v35 }
  0x57   :  { %567 = vmatprep.subr.mxu0 %v317_v36 }
  0x58   :  { %568 = vmatpush3.msra.mxu0 %v317_v36 }
  0x59   :  { %569 = vmatprep.subr.mxu0 %v316_v37 }
  0x5a   :  { %570 = vmatpush3.msra.mxu0 %v316_v37 }
  0x5b   :  { %571 = vmatprep.subr.mxu0 %v315_v38 }
  0x5c   :  { %572 = vmatpush3.msra.mxu0 %v315_v38 }
  0x5d   :  { %573 = vmatprep.subr.mxu0 %v314_v39 }
  0x5e   :  { %574 = vmatpush3.msra.mxu0 %v314_v39 }
  0x5f   :  { %575 = vmatprep.subr.mxu0 %v313_v40 }
  0x60   :  { %576 = vmatpush3.msra.mxu0 %v313_v40 }
  0x61   :  { %577 = vmatprep.subr.mxu0 %v312_v41 }
  0x62   :  { %578 = vmatpush3.msra.mxu0 %v312_v41 }
  0x63   :  { %579 = vmatprep.subr.mxu0 %v311_v42 }
  0x64   :  { %580 = vmatpush3.msra.mxu0 %v311_v42 }
  0x65   :  { %581 = vmatprep.subr.mxu0 %v310_v43 }
  0x66   :  { %582 = vmatpush3.msra.mxu0 %v310_v43 }
  0x67   :  { %583 = vmatprep.subr.mxu0 %v309_v44 }
  0x68   :  { %584 = vmatpush3.msra.mxu0 %v309_v44 }
  0x69   :  { %585 = vmatprep.subr.mxu0 %v308_v45 }
  0x6a   :  { %586 = vmatpush3.msra.mxu0 %v308_v45 }
  0x6b   :  { %587 = vmatprep.subr.mxu0 %v307_v46 }
  0x6c   :  { %588 = vmatpush3.msra.mxu0 %v307_v46 }
  0x6d   :  { %589 = vmatprep.subr.mxu0 %v306_v47 }
  0x6e   :  { %590 = vmatpush3.msra.mxu0 %v306_v47 }
  0x6f   :  { %591 = vmatprep.subr.mxu0 %v305_v48 }
  0x70   :  { %592 = vmatpush3.msra.mxu0 %v305_v48 }
  0x71   :  { %593 = vmatprep.subr.mxu0 %v304_v49 }
  0x72   :  { %594 = vmatpush3.msra.mxu0 %v304_v49 }
 0x112   :  { %v527_v51 = vpop.f32.mrf.mxu0 }
 0x113   :  { %v185_v52 = vadd.f32 %v527_v51, %v434_v50 }
 0x114   :  { %v179_v53 = vpop.f32.mrf.mxu0 }
 0x115   :  { %v437_v54 = vmul.f32 -1.442695, %v185_v52  ;;  %v180_v55 = vadd.f32 %v434_v50, %v179_v53  ;;  %v562_v61 = vpop.f32.mrf.mxu1 }
 0x116   :  { %v283_v3 = vadd.f32 %v562_v61, %v435_v62 }
 0x117   :  { %605 = vpow2.f32 %v437_v54  ;;  %v436_v56 = vmul.f32 -1.442695, %v180_v55  ;;  %v277_v0 = vpop.f32.mrf.mxu1 }
 0x118   :  { %v278_v5 = vadd.f32 %v435_v62, %v277_v0 }
 0x119   :  { %607 = vpow2.f32 %v436_v56 }
 0x124   :  { %v606_v57 = vpop.eup %605 }
 0x125   :  { %v293_v58 = vadd.f32 1.0, %v606_v57 }
 0x126   :  { %v608_v59 = vpop.eup %607 }
 0x127   :  { %609 = vrcp.f32 %v293_v58  ;;  %v292_v60 = vadd.f32 1.0, %v608_v59 }
 0x129   :  { %611 = vrcp.f32 %v292_v60 }
 0x134   :  { %v610_v63 = vpop.eup %609 }
 0x135   :  { %v299_v2 = vmul.f32 %v610_v63, %v185_v52 }
 0x136   :  { %v612_v1 = vpop.eup %611 }
 0x137   :  { %v298_v4 = vmul.f32 %v612_v1, %v180_v55  ;;  %v301_v7 = vmul.f32 %v299_v2, %v283_v3 }
 0x139   :  { %v300_v6 = vmul.f32 %v298_v4, %v278_v5 }
 0x13b   :  { %595 = vmatprep.mubr.f32.mxu0 %v300_v6 }
 0x13c   :  { %596 = vmatmul.mubr.f32.vlgmr.msra.gmra.mxu0 %v301_v7 }
 0x1fc   :  { %v597_v9 = vpop.f32.mrf.mxu0 }
 0x1fd   :  { %v412_v10 = vadd.f32 %v597_v9, %v438_v8 }
 0x1fe   :  { %v386_v11 = vpop.f32.mrf.mxu0 }
 0x1ff   :  { %414 = vst [vmem:[#allocation11 + $0x8] sm:$0xff] %v412_v10  ;;  %v411_v12 = vadd.f32 %v438_v8, %v386_v11 }
 0x201   :  { %413 = vst [vmem:[#allocation11] sm:$0xff] %v411_v12 }
 0x202   :  { %704 = shalt.err (!%p701_p10)
}
 0x203   :  { %426 = dma.vmem_to_hbm [thread:$0]  %s421_s25, 256, %s818_s7, [#allocation5], %s723_s29, %s723_s29, %s724_s30  }
 0x204   :  { %719 = dma.done.wait [#allocation5], 256  }
 0x205   :  { %720 = vsyncadd [#allocation5], 4294967040 }
 0x206   :  { %430 = vsyncpa [#allocation4], 1 }
 0x207   :  { %431 = vsyncpa [#allocation7], 1 }
 0x208   :  { %432 = vsyncpa [#allocation10], 1 }
 0x209   :  { %433 = vsyncpa [#allocation5], 1 }

</bundles_post_ra>
